<compile_context>
chip_gen: v5e
topology: v5e:2x2
jax: 0.10.0
libtpu: 0.0.40
codegen_flags: <defaults>
</compile_context>

<pallas_src>
import functools

import jax
import jax.numpy as jnp
from jax.experimental import pallas as pl
from jax.experimental.pallas import tpu as pltpu


# ----------------------------------------------------------------------------------- #
# 'max' / 'self_attention': whole bag as one lane-dense (C, N) VMEM block.
# ----------------------------------------------------------------------------------- #

def _mil_max_kernel(pct_ref, o_ref):
    o_ref[...] = jnp.max(pct_ref[...], axis=1, keepdims=True)            # (C, 1)


def _mil_selfattn_kernel(pct_ref, o_ref):
    x = pct_ref[...]
    o_ref[...] = (jnp.sum(x * x, axis=1, keepdims=True)
                  / (jnp.sum(x, axis=1, keepdims=True) + 1e-6))           # (C, 1)


def mil_max(pc):
    c = pc.shape[1]
    pct = pc.astype(jnp.float32).T                                        # (C, N) lane-dense
    out = pl.pallas_call(
        _mil_max_kernel,
        out_shape=jax.ShapeDtypeStruct((c, 1), jnp.float32),
    )(pct)
    return out[:, 0]


def mil_self_attention(pc):
    c = pc.shape[1]
    pct = pc.astype(jnp.float32).T
    out = pl.pallas_call(
        _mil_selfattn_kernel,
        out_shape=jax.ShapeDtypeStruct((c, 1), jnp.float32),
    )(pct)
    return out[:, 0]


# ----------------------------------------------------------------------------------- #
# 'attention': gated attention-MIL, one fused kernel over patch tiles.
# ----------------------------------------------------------------------------------- #

def _mil_attention_kernel(feats_ref, pc_ref, wv_ref, bv_ref, wu_ref, bu_ref, ww_ref,
                          o_ref, m_sc, l_sc, acc_sc, *, n_valid, tile_n):
    i = pl.program_id(0)

    @pl.when(i == 0)
    def _():
        m_sc[...] = jnp.full_like(m_sc, -jnp.inf)
        l_sc[...] = jnp.zeros_like(l_sc)
        acc_sc[...] = jnp.zeros_like(acc_sc)

    # Two big matmuls on the MXU in bf16, f32 accumulation.
    f = feats_ref[...]                                                    # (tn, L) bf16
    a_v = jnp.tanh(jnp.dot(f, wv_ref[...], preferred_element_type=jnp.float32)
                   + bv_ref[...])                                         # (tn, D) f32
    a_u = jax.nn.sigmoid(jnp.dot(f, wu_ref[...], preferred_element_type=jnp.float32)
                         + bu_ref[...])                                   # (tn, D) f32
    gate = a_v * a_u                                                      # (tn, D) f32

    # K=1 attention score: VPU multiply + XLU lane reduce (no 1-column MXU matmul).
    # The Linear(D,1) bias bw is omitted: softmax over the patch axis is shift-invariant.
    s = jnp.sum(gate * ww_ref[...], axis=-1, keepdims=True)               # (tn, 1)

    # Mask the ragged tail in-kernel (no wrapper-side padding / mask arrays).
    row = i * tile_n + jax.lax.broadcasted_iota(jnp.int32, (tile_n, 1), 0)
    valid = row < n_valid                                                  # (tn, 1)
    s = jnp.where(valid, s, -jnp.inf)

    # Online softmax over the whole bag, fused with the per-class weighted sum.
    m_old = m_sc[...]                                                      # (1, 1)
    m_new = jnp.maximum(m_old, jnp.max(s, keepdims=True))
    alpha = jnp.where(m_new == -jnp.inf, 0.0, jnp.exp(m_old - m_new))      # all-masked guard
    p = jnp.where(valid, jnp.exp(s - m_new), 0.0)                          # (tn, 1)
    contrib = jnp.where(valid, p * pc_ref[...], 0.0)                       # (tn, C), kills garbage pads
    l_sc[...] = alpha * l_sc[...] + jnp.sum(p, keepdims=True)
    acc_sc[...] = alpha * acc_sc[...] + jnp.sum(contrib, axis=0, keepdims=True)
    m_sc[...] = m_new

    @pl.when(i == pl.num_programs(0) - 1)
    def _():
        o_ref[...] = (acc_sc[...] * pl.reciprocal(l_sc[...], approx=True)).astype(o_ref.dtype)


def mil_attention_weighted(pc, feats, params, *, tile_n=512):
    """Full per-class gated-attention weighted vector: (pc^T @ softmax(scores, 0)).ravel()."""
    n, c = pc.shape
    l_dim = feats.shape[1]
    d_dim = params["wv"].shape[1]
    num_tiles = pl.cdiv(n, tile_n)

    feats_bf = feats.astype(jnp.bfloat16)               # dominant HBM stream in bf16
    wv_bf = params["wv"].astype(jnp.bfloat16)
    wu_bf = params["wu"].astype(jnp.bfloat16)
    bv = params["bv"].reshape(1, d_dim).astype(jnp.float32)
    bu = params["bu"].reshape(1, d_dim).astype(jnp.float32)
    ww = params["ww"].reshape(1, d_dim).astype(jnp.float32)   # (D, 1) column -> (1, D) row
    pcf = pc.astype(jnp.float32)

    kernel = functools.partial(_mil_attention_kernel, n_valid=n, tile_n=tile_n)

    out = pl.pallas_call(
        kernel,
        out_shape=jax.ShapeDtypeStruct((1, c), jnp.float32),
        grid=(num_tiles,),
        in_specs=[pl.BlockSpec((tile_n, l_dim), lambda i: (i, 0)),   # feats tile (bf16)
                  pl.BlockSpec((tile_n, c), lambda i: (i, 0)),       # pc tile (f32)
                  pl.BlockSpec((l_dim, d_dim), lambda i: (0, 0)),    # Wv (resident, bf16)
                  pl.BlockSpec((1, d_dim), lambda i: (0, 0)),        # bv
                  pl.BlockSpec((l_dim, d_dim), lambda i: (0, 0)),    # Wu (resident, bf16)
                  pl.BlockSpec((1, d_dim), lambda i: (0, 0)),        # bu
                  pl.BlockSpec((1, d_dim), lambda i: (0, 0))],       # Ww row
        out_specs=pl.BlockSpec((1, c), lambda i: (0, 0)),
        scratch_shapes=[pltpu.VMEM((1, 1), jnp.float32),   # running max m
                        pltpu.VMEM((1, 1), jnp.float32),   # running denom l
                        pltpu.VMEM((1, c), jnp.float32)],  # running weighted sum
        compiler_params=pltpu.CompilerParams(
            dimension_semantics=("arbitrary",),            # single reduction (bag) axis
            vmem_limit_bytes=32 << 20),                    # safe on v7x's 64 MiB/TC
    )(feats_bf, pcf, wv_bf, bv, wu_bf, bu, ww)
    return out[0]


# ----------------------------------------------------------------------------------- #
# module-level forward
# ----------------------------------------------------------------------------------- #

def mil_aggregation(patch_classification, feats=None, params=None, *,
                    aggregation="max", slicing=True, tile_n=512):
    """Forward pass of MILAggregation."""
    if aggregation == "max":
        out = mil_max(patch_classification)
    elif aggregation == "self_attention":
        out = mil_self_attention(patch_classification)
    elif aggregation == "attention":
        full = mil_attention_weighted(patch_classification, feats, params, tile_n=tile_n)
        # torch.diag(mm(pc^T, w)) on a (C, 1) matrix keeps only class 0 (K == 1) and the
        # in-branch [1:] empties it — reproduced faithfully.
        # TODO(synk): attention mode therefore returns an empty vector under the module's
        # default K=1 / slicing=True, exactly like the PyTorch reference.
        out = full[:1][1:]
    else:
        raise ValueError(f"unknown aggregation: {aggregation}")
    if slicing:
        out = out[1:]
    return out


def init_attention_params(key, L=512, D=128, K=1):
    """Deterministic Linear-style init matching attention_V/U (L->D) and attention_weights (D->K)."""
    kv, ku, kw = jax.random.split(key, 3)
    sl, sd = 1.0 / (L ** 0.5), 1.0 / (D ** 0.5)
    return {
        "wv": jax.random.uniform(kv, (L, D), jnp.float32, -sl, sl),
        "bv": jnp.zeros((D,), jnp.float32),
        "wu": jax.random.uniform(ku, (L, D), jnp.float32, -sl, sl),
        "bu": jnp.zeros((D,), jnp.float32),
        "ww": jax.random.uniform(kw, (D, K), jnp.float32, -sd, sd),
        "bw": jnp.zeros((K,), jnp.float32),
    }


# ----------------------------------------------------------------------------------- #
# demo
# ----------------------------------------------------------------------------------- #

if __name__ == "__main__":
    key = jax.random.PRNGKey(0)
    k_pc, k_f, k_p = jax.random.split(key, 3)

    N, C, L, D = 300, 4, 512, 128           # bag of 300 patches, nClasses=4, L=512, D=128
    pc = jax.nn.softmax(jax.random.normal(k_pc, (N, C), jnp.float32), axis=1)
    feats = jax.random.normal(k_f, (N, L), jnp.float32)
    params = init_attention_params(k_p, L=L, D=D, K=1)

    # --- 'max' (module default) ---
    out_max = jax.jit(lambda p: mil_aggregation(p, aggregation="max", slicing=True))(pc)
    jax.block_until_ready(out_max)
    ref_max = jnp.max(pc, axis=0)[1:]
    assert out_max.shape == (C - 1,), out_max.shape
    assert bool(jnp.allclose(out_max, ref_max, atol=1e-6, rtol=1e-6)), "max mismatch"

    # --- 'self_attention' ---
    out_sa = jax.jit(lambda p: mil_aggregation(p, aggregation="self_attention",
                                               slicing=True))(pc)
    jax.block_until_ready(out_sa)
    ref_sa = (jnp.sum(pc * pc, axis=0) / (jnp.sum(pc, axis=0) + 1e-6))[1:]
    assert out_sa.shape == (C - 1,), out_sa.shape
    assert bool(jnp.allclose(out_sa, ref_sa, atol=1e-5, rtol=1e-5)), "self_attention mismatch"

    # --- 'attention': validate the kernel's full per-class weighted vector ---
    hi = jax.lax.Precision.HIGHEST
    a_v = jnp.tanh(jnp.dot(feats, params["wv"], precision=hi) + params["bv"])
    a_u = jax.nn.sigmoid(jnp.dot(feats, params["wu"], precision=hi) + params["bu"])
    scores = jnp.dot(a_v * a_u, params["ww"], precision=hi) + params["bw"]
    w = jax.nn.softmax(scores, axis=0)
    ref_full = jnp.dot(pc.T, w, precision=hi)[:, 0]

    full = jax.jit(mil_attention_weighted)(pc, feats, params)   # single tile (N <= 512)
    jax.block_until_ready(full)
    assert full.shape == (C,), full.shape
    assert bool(jnp.allclose(full, ref_full, atol=5e-3, rtol=5e-2)), "attention mismatch"

    # Multi-tile + ragged-tail path (grid of 3 at tile_n=128, last tile masked in-kernel).
    full_small = jax.jit(lambda p, f, prm: mil_attention_weighted(p, f, prm, tile_n=128))(
        pc, feats, params)
    jax.block_until_ready(full_small)
    assert bool(jnp.allclose(full_small, ref_full, atol=5e-3, rtol=5e-2)), \
        "attention (tiled) mismatch"

    # Faithful module output: diag of a (C,1) matrix keeps only class 0, then [1:] twice.
    out_attn = mil_aggregation(pc, feats, params, aggregation="attention", slicing=True)
    jax.block_until_ready(out_attn)
    assert out_attn.shape == (0,), out_attn.shape

    assert bool(jnp.all(jnp.isfinite(out_max))) and bool(jnp.all(jnp.isfinite(out_sa)))
    assert bool(jnp.all(jnp.isfinite(full))) and bool(jnp.all(jnp.isfinite(full_small)))
    print("KERNEL_OK")
</pallas_src>

<mosaic_0001>
module attributes {stable_mosaic.version = 11 : i64} {
  func.func @_mil_max_kernel(%arg0: memref<4x300xf32, #tpu.memory_space<vmem>>, %arg1: memref<4x1xf32, #tpu.memory_space<vmem>>) attributes {dimension_semantics = [], scalar_prefetch = 0 : i64, scratch_operands = 0 : i64, tpu.core_type = #tpu.core_type<tc>} {
    %c0 = arith.constant 0 : index
    %c0_0 = arith.constant 0 : index
    %0 = vector.load %arg0[%c0, %c0_0] : memref<4x300xf32, #tpu.memory_space<vmem>>, vector<4x300xf32>
    %cst = arith.constant dense<0xFF800000> : vector<4xf32>
    %1 = vector.multi_reduction <maximumf>, %0, %cst [1] : vector<4x300xf32> to vector<4xf32>
    %2 = vector.shape_cast %1 : vector<4xf32> to vector<4x1xf32>
    %c0_1 = arith.constant 0 : index
    %c0_2 = arith.constant 0 : index
    %3 = vector.load %arg1[%c0_1, %c0_2] : memref<4x1xf32, #tpu.memory_space<vmem>>, vector<4x1xf32>
    tpu.vector_store %arg1[%c0_1, %c0_2], %2 {strides = array<i32>} : memref<4x1xf32, #tpu.memory_space<vmem>>, vector<4x1xf32>,
    return
  }
}

</mosaic_0001>

<bundles_post_ra>
// kernel: _lambda_.1
= control target key start
LH: loop header
LB: loop body
LE: loop exit
PB: predicated region body
PF: predicated region fallthrough
CT: control target
= control target key end

     0   :  { %6 = vsyncpa [#allocation3], 0  ;;  %s78_s9 = smov [#allocation2]   ;;  %s95_s0 = inlined_call_operand.hbm [shape: f32[4,300], index: 0, kind: input, shape index: {}]   ;;  %s96_s1 = inlined_call_operand.vmem [shape: f32[4,1], index: 1, kind: output, shape index: {}]  }
   0x1   :  { %s12_s8 = sshll.u32 %s95_s0, 4  ;;  %s14_s10 = sshll.u32 %s78_s9, 4  ;;  %s13_s8 = int_to_ptr.hbm [resolvable:$true] %s12_s8  ;;  %s15_s10 = int_to_ptr.vmem [resolvable:$true] %s14_s10 }
   0x2   :  { %17 = dma.hbm_to_vmem [thread:$0]  %s13_s8, 192, %s15_s10, [#allocation3]  }
   0x3   :  { %76 = dma.done.wait [#allocation3], 192  }
   0x4   :  { %77 = vsyncadd [#allocation3], 4294967104  ;;  %v22_v0 = vld [vmem:[#allocation2] sm:$0xff]  ;;  %v23_v1 = vld [vmem:[#allocation2 + $0x8] sm:$0xf]  ;;  %vm35_vm0 = vcmask 1043456  }
   0x5   :  { %26 = vst [vmem:[#allocation1] ss:$2 sm:$0xff] %v22_v0  ;;  %vm38_vm1 = vcmask 355328   ;;  %vm44_vm2 = vcmask 3072  }
   0x6   :  { %28 = vst [vmem:[#allocation1 + $0x10] ss:$2 sm:$0xff] %v23_v1 }
   0xc   :  { %v29_v2 = vld.sshfl [vmem:[#allocation1] sm:$0xff pattern:$0x75316420]  ;;  %v30_v3 = vld.sshfl [vmem:[#allocation1 + $0x8] sm:$0xff pattern:$0x75316420] }
   0xd   :  { %v31_v4 = vld.sshfl [vmem:[#allocation1 + $0x10] sm:$0xff pattern:$0x75316420]  ;;  %v36_v5 = vsel %vm35_vm0, %v29_v2, -inf  ;;  %v37_v6 = vsel %vm35_vm0, %v30_v3, -inf }
   0xe   :  { %v39_v7 = vsel %vm38_vm1, %v31_v4, -inf  ;;  %v40_v8 = vmax.f32 %v36_v5, %v37_v6 }
  0x10   :  { %v41_v9 = vmax.f32 %v40_v8, %v39_v7 }
  0x12   :  { %42 = vmax.xlane.f32.xlu0 %v41_v9 }
  0x85   :  { %v43_v10 = vpop.xlane.xlu0 %42 }
  0x86   :  { %45 = vst.msk [vmem:[%s96_s1] sm:$0xf] %vm44_vm2, %v43_v10 }
  0x87   :  { %50 = vsyncpa [#allocation3], 1 }

</bundles_post_ra>
